<compile_context>
chip_gen: v5e
topology: v5e:2x2
jax: 0.10.0
libtpu: 0.0.40
codegen_flags: <defaults>
</compile_context>

<pallas_src>
import functools
import math

import jax
import jax.numpy as jnp
from jax import lax
from jax.experimental import pallas as pl
from jax.experimental.pallas import tpu as pltpu

_MASK_VALUE = -1e30  # large finite negative (NOT -inf) so online softmax never NaNs


def _qkv_proj_kernel(x_ref, wq_ref, wk_ref, wv_ref, q_ref, k_ref, v_ref, *, scale):
    x = x_ref[...]  # bf16 (block_m, in_dim)
    q = jnp.dot(x, wq_ref[...], preferred_element_type=jnp.float32)
    k = jnp.dot(x, wk_ref[...], preferred_element_type=jnp.float32)
    v = jnp.dot(x, wv_ref[...], preferred_element_type=jnp.float32)
    # Fold 1/sqrt(d_k) into q once (O(seq*d) instead of scaling (seq, seq) scores).
    q_ref[...] = (q * scale).astype(q_ref.dtype)
    k_ref[...] = k.astype(k_ref.dtype)
    v_ref[...] = v.astype(v_ref.dtype)


def _flash_attn_kernel(q_ref, k_ref, v_ref, o_ref, m_ref, l_ref, acc_ref):
    qi = pl.program_id(0)
    ki = pl.program_id(1)
    block_q = q_ref.shape[0]
    block_kv = k_ref.shape[0]

    @pl.when(ki == 0)
    def _init():
        m_ref[...] = jnp.full_like(m_ref, _MASK_VALUE)
        l_ref[...] = jnp.zeros_like(l_ref)
        acc_ref[...] = jnp.zeros_like(acc_ref)

    # Skip kv tiles that lie entirely above the causal diagonal for this q tile.
    @pl.when(ki * block_kv < (qi + 1) * block_q)
    def _compute():
        q = q_ref[...]  # bf16, already scaled by 1/sqrt(d_k)
        k = k_ref[...]  # bf16
        # NT matmul on the MXU without materializing a transpose of k.
        s = lax.dot_general(q, k, (((1,), (1,)), ((), ())),
                            preferred_element_type=jnp.float32)  # (TQ, TKV) f32

        # Per-tile causal mask from global row/col offsets (small iotas, not seq^2).
        row = qi * block_q + lax.broadcasted_iota(jnp.int32, s.shape, 0)
        col = ki * block_kv + lax.broadcasted_iota(jnp.int32, s.shape, 1)
        mask = col <= row
        s = jnp.where(mask, s, _MASK_VALUE)

        # Online softmax update (guarded max + zeroed masked probabilities).
        m_prev = m_ref[...]
        m_new = jnp.maximum(m_prev, jnp.max(s, axis=-1, keepdims=True))
        alpha = jnp.exp(m_prev - m_new)
        p = jnp.where(mask, jnp.exp(s - m_new), 0.0)
        l_ref[...] = alpha * l_ref[...] + jnp.sum(p, axis=-1, keepdims=True)
        acc_ref[...] = alpha * acc_ref[...] + jnp.dot(
            p.astype(v_ref.dtype), v_ref[...], preferred_element_type=jnp.float32)
        m_ref[...] = m_new

    @pl.when(ki == pl.num_programs(1) - 1)
    def _finalize():
        # Normalize the (TQ, d) accumulator once; approx reciprocal runs on the EUP.
        inv_l = pl.reciprocal(l_ref[...], approx=True)
        o_ref[...] = (acc_ref[...] * inv_l).astype(o_ref.dtype)


def self_attention_v2(x, wq, wk, wv, *, block_q=128, block_kv=128, block_m=128):
    """x: (seq, in_dim) f32; wq/wk/wv: (in_dim, out_dim) f32. Returns (seq, out_dim) f32."""
    seq, in_dim = x.shape
    out_dim = wq.shape[1]
    d_k = out_dim

    # Pad head dim to a lane-dense 128 multiple, seq to the tile size.
    d_p = max(128, -(-out_dim // 128) * 128)
    seq_mult = math.lcm(block_q, block_kv, block_m)
    seq_p = -(-seq // seq_mult) * seq_mult

    # bf16 operands for the MXU; zero padding keeps the math exact
    # (padded keys are masked by causality, padded columns contribute zero).
    x_p = jnp.zeros((seq_p, in_dim), jnp.bfloat16).at[:seq, :].set(x.astype(jnp.bfloat16))

    def _pad_w(w):
        return jnp.zeros((in_dim, d_p), jnp.bfloat16).at[:, :out_dim].set(
            w.astype(jnp.bfloat16))

    wq_p, wk_p, wv_p = _pad_w(wq), _pad_w(wk), _pad_w(wv)

    # ---- Kernel 1: QKV projections (q pre-scaled by 1/sqrt(d_k)) ----
    num_m = seq_p // block_m
    w_spec = pl.BlockSpec((in_dim, d_p), lambda i: (0, 0))   # VMEM-resident weights
    qkv_shape = jax.ShapeDtypeStruct((seq_p, d_p), jnp.bfloat16)
    q, k, v = pl.pallas_call(
        functools.partial(_qkv_proj_kernel, scale=1.0 / math.sqrt(d_k)),
        out_shape=(qkv_shape, qkv_shape, qkv_shape),
        grid_spec=pltpu.PrefetchScalarGridSpec(
            num_scalar_prefetch=0,
            grid=(num_m,),
            in_specs=[pl.BlockSpec((block_m, in_dim), lambda i: (i, 0)),
                      w_spec, w_spec, w_spec],
            out_specs=(pl.BlockSpec((block_m, d_p), lambda i: (i, 0)),
                       pl.BlockSpec((block_m, d_p), lambda i: (i, 0)),
                       pl.BlockSpec((block_m, d_p), lambda i: (i, 0))),
        ),
        compiler_params=pltpu.CompilerParams(dimension_semantics=("parallel",)),
    )(x_p, wq_p, wk_p, wv_p)

    # ---- Kernel 2: causal flash attention with online softmax ----
    num_q = seq_p // block_q
    num_kv = seq_p // block_kv

    def kv_index_map(i, j):
        # Clamp to the last causally-relevant kv block for this q tile so fully-masked
        # kv tiles never trigger a new HBM->VMEM DMA (their compute is skipped anyway).
        last = ((i + 1) * block_q - 1) // block_kv
        return (jnp.minimum(j, last), 0)

    o = pl.pallas_call(
        _flash_attn_kernel,
        out_shape=jax.ShapeDtypeStruct((seq_p, d_p), jnp.float32),
        grid_spec=pltpu.PrefetchScalarGridSpec(
            num_scalar_prefetch=0,
            grid=(num_q, num_kv),  # kv (reduction) axis innermost
            in_specs=[pl.BlockSpec((block_q, d_p), lambda i, j: (i, 0)),
                      pl.BlockSpec((block_kv, d_p), kv_index_map),
                      pl.BlockSpec((block_kv, d_p), kv_index_map)],
            out_specs=pl.BlockSpec((block_q, d_p), lambda i, j: (i, 0)),
            scratch_shapes=[pltpu.VMEM((block_q, 1), jnp.float32),    # m
                            pltpu.VMEM((block_q, 1), jnp.float32),    # l
                            pltpu.VMEM((block_q, d_p), jnp.float32)], # acc
        ),
        compiler_params=pltpu.CompilerParams(
            dimension_semantics=("parallel", "arbitrary")),
    )(q, k, v)

    return o[:seq, :out_dim]


def _reference(x, wq, wk, wv):
    q = x @ wq
    k = x @ wk
    v = x @ wv
    s = q @ k.T
    mask = jnp.tril(jnp.ones_like(s, dtype=bool))
    s = jnp.where(mask, s, -jnp.inf)
    w = jax.nn.softmax(s / math.sqrt(k.shape[-1]), axis=-1)
    return w @ v


if __name__ == "__main__":
    key = jax.random.PRNGKey(0)
    seq, in_dim, out_dim = 8, 32, 16

    k_x, k_q, k_k, k_v = jax.random.split(key, 4)
    x = jax.random.normal(k_x, (seq, in_dim), dtype=jnp.float32)

    # Deterministic parameter init (mimic torch Linear's uniform(-1/sqrt(in), 1/sqrt(in))).
    bound = 1.0 / math.sqrt(in_dim)
    wq = jax.random.uniform(k_q, (in_dim, out_dim), jnp.float32, -bound, bound)
    wk = jax.random.uniform(k_k, (in_dim, out_dim), jnp.float32, -bound, bound)
    wv = jax.random.uniform(k_v, (in_dim, out_dim), jnp.float32, -bound, bound)

    out = jax.block_until_ready(self_attention_v2(x, wq, wk, wv))

    ref = _reference(x, wq, wk, wv)
    assert out.shape == (seq, out_dim)
    # bf16 MXU operands -> looser tolerance than the pure-f32 reference.
    assert jnp.allclose(out, ref, atol=3e-2, rtol=3e-2), (
        f"mismatch vs reference: max abs err {float(jnp.max(jnp.abs(out - ref)))}")

    print("KERNEL_OK")
</pallas_src>

<mosaic_0001>
module attributes {stable_mosaic.version = 11 : i64} {
  func.func @_qkv_proj_kernel(%arg0: i32, %arg1: memref<128x32xbf16, #tpu.memory_space<vmem>>, %arg2: memref<32x128xbf16, #tpu.memory_space<vmem>>, %arg3: memref<32x128xbf16, #tpu.memory_space<vmem>>, %arg4: memref<32x128xbf16, #tpu.memory_space<vmem>>, %arg5: memref<128x128xbf16, #tpu.memory_space<vmem>>, %arg6: memref<128x128xbf16, #tpu.memory_space<vmem>>, %arg7: memref<128x128xbf16, #tpu.memory_space<vmem>>) attributes {dimension_semantics = [#tpu.dimension_semantics<parallel>], iteration_bounds = array<i64: 1>, scalar_prefetch = 0 : i64, scratch_operands = 0 : i64, tpu.core_type = #tpu.core_type<tc>, window_params = [{transform_indices = @transform_0, window_bounds = array<i64: 128, 32>}, {pipeline_mode = #tpu.pipeline_mode<synchronous>, transform_indices = @transform_1, window_bounds = array<i64: 32, 128>}, {pipeline_mode = #tpu.pipeline_mode<synchronous>, transform_indices = @transform_2, window_bounds = array<i64: 32, 128>}, {pipeline_mode = #tpu.pipeline_mode<synchronous>, transform_indices = @transform_3, window_bounds = array<i64: 32, 128>}, {transform_indices = @transform_4, window_bounds = array<i64: 128, 128>}, {transform_indices = @transform_5, window_bounds = array<i64: 128, 128>}, {transform_indices = @transform_6, window_bounds = array<i64: 128, 128>}]} {
    %c0 = arith.constant 0 : index
    %c0_0 = arith.constant 0 : index
    %0 = vector.load %arg1[%c0, %c0_0] : memref<128x32xbf16, #tpu.memory_space<vmem>>, vector<128x32xbf16>
    %c0_1 = arith.constant 0 : index
    %c0_2 = arith.constant 0 : index
    %1 = vector.load %arg2[%c0_1, %c0_2] : memref<32x128xbf16, #tpu.memory_space<vmem>>, vector<32x128xbf16>
    %cst = arith.constant dense<0.000000e+00> : vector<128x128xf32>
    %2 = tpu.matmul %0, %1, %cst {dimension_numbers = #tpu.dot_dimension_numbers<[1], [0], [0], [1], [0, 0, 1, 1], [], []>} : vector<128x32xbf16>, vector<32x128xbf16>, vector<128x128xf32> -> vector<128x128xf32>
    %c0_3 = arith.constant 0 : index
    %c0_4 = arith.constant 0 : index
    %3 = vector.load %arg3[%c0_3, %c0_4] : memref<32x128xbf16, #tpu.memory_space<vmem>>, vector<32x128xbf16>
    %cst_5 = arith.constant dense<0.000000e+00> : vector<128x128xf32>
    %4 = tpu.matmul %0, %3, %cst_5 {dimension_numbers = #tpu.dot_dimension_numbers<[1], [0], [0], [1], [0, 0, 1, 1], [], []>} : vector<128x32xbf16>, vector<32x128xbf16>, vector<128x128xf32> -> vector<128x128xf32>
    %c0_6 = arith.constant 0 : index
    %c0_7 = arith.constant 0 : index
    %5 = vector.load %arg4[%c0_6, %c0_7] : memref<32x128xbf16, #tpu.memory_space<vmem>>, vector<32x128xbf16>
    %cst_8 = arith.constant dense<0.000000e+00> : vector<128x128xf32>
    %6 = tpu.matmul %0, %5, %cst_8 {dimension_numbers = #tpu.dot_dimension_numbers<[1], [0], [0], [1], [0, 0, 1, 1], [], []>} : vector<128x32xbf16>, vector<32x128xbf16>, vector<128x128xf32> -> vector<128x128xf32>
    %cst_9 = arith.constant 2.500000e-01 : f32
    %7 = vector.broadcast %cst_9 : f32 to vector<128x128xf32>
    %8 = arith.mulf %2, %7 : vector<128x128xf32>
    %9 = arith.truncf %8 : vector<128x128xf32> to vector<128x128xbf16>
    %c0_10 = arith.constant 0 : index
    %c0_11 = arith.constant 0 : index
    %10 = vector.load %arg5[%c0_10, %c0_11] : memref<128x128xbf16, #tpu.memory_space<vmem>>, vector<128x128xbf16>
    tpu.vector_store %arg5[%c0_10, %c0_11], %9 {strides = array<i32>} : memref<128x128xbf16, #tpu.memory_space<vmem>>, vector<128x128xbf16>,
    %11 = arith.truncf %4 : vector<128x128xf32> to vector<128x128xbf16>
    %c0_12 = arith.constant 0 : index
    %c0_13 = arith.constant 0 : index
    %12 = vector.load %arg6[%c0_12, %c0_13] : memref<128x128xbf16, #tpu.memory_space<vmem>>, vector<128x128xbf16>
    tpu.vector_store %arg6[%c0_12, %c0_13], %11 {strides = array<i32>} : memref<128x128xbf16, #tpu.memory_space<vmem>>, vector<128x128xbf16>,
    %13 = arith.truncf %6 : vector<128x128xf32> to vector<128x128xbf16>
    %c0_14 = arith.constant 0 : index
    %c0_15 = arith.constant 0 : index
    %14 = vector.load %arg7[%c0_14, %c0_15] : memref<128x128xbf16, #tpu.memory_space<vmem>>, vector<128x128xbf16>
    tpu.vector_store %arg7[%c0_14, %c0_15], %13 {strides = array<i32>} : memref<128x128xbf16, #tpu.memory_space<vmem>>, vector<128x128xbf16>,
    return
  }
  func.func @transform_0(%arg0: i32) -> (i32, i32) {
    %c0_i32 = arith.constant 0 : i32
    %c0_i32_0 = arith.constant 0 : i32
    return %arg0, %c0_i32 : i32, i32
  }
  func.func @transform_1(%arg0: i32) -> (i32, i32) {
    %c0_i32 = arith.constant 0 : i32
    %c0_i32_0 = arith.constant 0 : i32
    %c0_i32_1 = arith.constant 0 : i32
    return %c0_i32, %c0_i32_0 : i32, i32
  }
  func.func @transform_2(%arg0: i32) -> (i32, i32) {
    %c0_i32 = arith.constant 0 : i32
    %c0_i32_0 = arith.constant 0 : i32
    %c0_i32_1 = arith.constant 0 : i32
    return %c0_i32, %c0_i32_0 : i32, i32
  }
  func.func @transform_3(%arg0: i32) -> (i32, i32) {
    %c0_i32 = arith.constant 0 : i32
    %c0_i32_0 = arith.constant 0 : i32
    %c0_i32_1 = arith.constant 0 : i32
    return %c0_i32, %c0_i32_0 : i32, i32
  }
  func.func @transform_4(%arg0: i32) -> (i32, i32) {
    %c0_i32 = arith.constant 0 : i32
    %c0_i32_0 = arith.constant 0 : i32
    return %arg0, %c0_i32 : i32, i32
  }
  func.func @transform_5(%arg0: i32) -> (i32, i32) {
    %c0_i32 = arith.constant 0 : i32
    %c0_i32_0 = arith.constant 0 : i32
    return %arg0, %c0_i32 : i32, i32
  }
  func.func @transform_6(%arg0: i32) -> (i32, i32) {
    %c0_i32 = arith.constant 0 : i32
    %c0_i32_0 = arith.constant 0 : i32
    return %arg0, %c0_i32 : i32, i32
  }
}

</mosaic_0001>

<bundles_post_ra>
// kernel: tpu_custom_call.1
= control target key start
LH: loop header
LB: loop body
LE: loop exit
PB: predicated region body
PF: predicated region fallthrough
CT: control target
= control target key end

     0   :  { %12 = vsyncpa [#allocation3], 0  ;;  %s901_s0 = inlined_call_operand.vmem [shape: bf16[128,32], index: 0, kind: input, shape index: {}]   ;;  %s902_s1 = inlined_call_operand.vmem [shape: bf16[32,128], index: 1, kind: input, shape index: {}]   ;;  %s903_s2 = inlined_call_operand.vmem [shape: bf16[32,128], index: 2, kind: input, shape index: {}]   ;;  %s904_s3 = inlined_call_operand.vmem [shape: bf16[32,128], index: 3, kind: input, shape index: {}]   ;;  %s905_s4 = inlined_call_operand.hbm [shape: bf16[128,128], index: 4, kind: output, shape index: {0}]   ;;  %s906_s5 = inlined_call_operand.hbm [shape: bf16[128,128], index: 5, kind: output, shape index: {1}]   ;;  %s907_s6 = inlined_call_operand.hbm [shape: bf16[128,128], index: 6, kind: output, shape index: {2}]  }
   0x1   :  { %v553_v0 = vld [vmem:[%s902_s1 + $0x8] sm:$0xff]  ;;  %v552_v3 = vld [vmem:[%s902_s1] sm:$0xff] }
   0x2   :  { %v555_v1 = vld [vmem:[%s903_s2 + $0x8] sm:$0xff]  ;;  %126 = vmatpush.bf16.msra.mxu0 %v553_v0  ;;  %699 = vmatpush.bf16.msra.mxu3 %v553_v0  ;;  %v554_v4 = vld [vmem:[%s903_s2] sm:$0xff] }
   0x3   :  { %v557_v2 = vld [vmem:[%s904_s3 + $0x8] sm:$0xff]  ;;  %191 = vmatpush.bf16.msra.mxu1 %v555_v1  ;;  %v556_v5 = vld [vmem:[%s904_s3] sm:$0xff] }
   0x4   :  { %256 = vmatpush.bf16.msra.mxu2 %v557_v2 }
   0x5   :  { %13 = vsyncpa [#allocation5], 0  ;;  %v544_v6 = vld [vmem:[%s901_s0] sm:$0xff]  ;;  %v550_v7 = vld [vmem:[%s901_s0 + $0x30] sm:$0xff]  ;;  %vm95_vm0 = vcmask 261120   ;;  %s430_s25 = sshll.u32 %s906_s5, 4  ;;  %s431_s25 = int_to_ptr.hbm [resolvable:$true] %s430_s25 }
   0x6   :  { %127 = vmatpush.bf16.msra.mxu0 %v552_v3  ;;  %700 = vmatpush.bf16.msra.mxu3 %v552_v3  ;;  %v545_v8 = vld [vmem:[%s901_s0 + $0x8] sm:$0xff]  ;;  %v551_v9 = vld [vmem:[%s901_s0 + $0x38] sm:$0xff]  ;;  %v546_v10 = vld [vmem:[%s901_s0 + $0x10] sm:$0xff]  ;;  %s787_s26 = smov [#allocation2]   ;;  %s417_s30 = sshll.u32 %s905_s4, 4  ;;  %s418_s30 = int_to_ptr.hbm [resolvable:$true] %s417_s30 }
   0x7   :  { %192 = vmatpush.bf16.msra.mxu1 %v554_v4  ;;  %v547_v11 = vld [vmem:[%s901_s0 + $0x18] sm:$0xff]  ;;  %v548_v12 = vld [vmem:[%s901_s0 + $0x20] sm:$0xff]  ;;  %v549_v13 = vld [vmem:[%s901_s0 + $0x28] sm:$0xff]  ;;  %s786_s0 = smov [#allocation4]   ;;  %s415_s27 = sshll.u32 %s787_s26, 4  ;;  %s416_s27 = int_to_ptr.vmem [resolvable:$true] %s415_s27 }
   0x8   :  { %257 = vmatpush.bf16.msra.mxu2 %v556_v5  ;;  %s428_s22 = sshll.u32 %s786_s0, 4  ;;  %s788_s7 = smov [#allocation6]   ;;  %s429_s22 = int_to_ptr.vmem [resolvable:$true] %s428_s22 }
   0x9   :  { %504 = vmatmul.msk.bf16.vlgmr.msra.gmra.mxu0 %vm95_vm0, %v544_v6  ;;  %510 = vmatmul.msk.bf16.vlgmr.msra.gmra.mxu3 %vm95_vm0, %v550_v7  ;;  %s441_s8 = sshll.u32 %s788_s7, 4  ;;  %s443_s10 = sshll.u32 %s907_s6, 4  ;;  %s442_s8 = int_to_ptr.vmem [resolvable:$true] %s441_s8  ;;  %s444_s10 = int_to_ptr.hbm [resolvable:$true] %s443_s10 }
   0xa   :  { %701 = vmatpush.bf16.msrb.mxu3 %v555_v1  ;;  %520 = vmatmul.msk.bf16.vlgmr.msra.gmra.mxu1 %vm95_vm0, %v544_v6  ;;  %s789_s11 = smov 64   ;;  %s790_s12 = smov 4  }
   0xb   :  { %536 = vmatmul.msk.bf16.vlgmr.msra.gmra.mxu2 %vm95_vm0, %v544_v6 }
   0xe   :  { %702 = vmatpush.bf16.msrb.mxu3 %v554_v4 }
  0x12   :  { %703 = vmatpush.bf16.msra.mxu3 %v557_v2 }
  0x16   :  { %704 = vmatpush.bf16.msra.mxu3 %v556_v5 }
  0x19   :  { %505 = vmatmul.msk.bf16.gmra.mxu0 %vm95_vm0, %v545_v8  ;;  %511 = vmatmul.msk.bf16.gmra.mxu3 %vm95_vm0, %v551_v9 }
  0x1a   :  { %521 = vmatmul.msk.bf16.gmra.mxu1 %vm95_vm0, %v545_v8 }
  0x1b   :  { %537 = vmatmul.msk.bf16.gmra.mxu2 %vm95_vm0, %v545_v8 }
  0x29   :  { %506 = vmatmul.msk.bf16.gmra.mxu0 %vm95_vm0, %v546_v10  ;;  %526 = vmatmul.msk.bf16.vlgmr.msrb.gmra.mxu3 %vm95_vm0, %v550_v7 }
  0x2a   :  { %522 = vmatmul.msk.bf16.gmra.mxu1 %vm95_vm0, %v546_v10 }
  0x2b   :  { %538 = vmatmul.msk.bf16.gmra.mxu2 %vm95_vm0, %v546_v10 }
  0x39   :  { %507 = vmatmul.msk.bf16.gmra.mxu0 %vm95_vm0, %v547_v11  ;;  %527 = vmatmul.msk.bf16.gmra.mxu3 %vm95_vm0, %v551_v9 }
  0x3a   :  { %523 = vmatmul.msk.bf16.gmra.mxu1 %vm95_vm0, %v547_v11 }
  0x3b   :  { %539 = vmatmul.msk.bf16.gmra.mxu2 %vm95_vm0, %v547_v11 }
  0x49   :  { %508 = vmatmul.msk.bf16.gmra.mxu0 %vm95_vm0, %v548_v12  ;;  %542 = vmatmul.msk.bf16.vlgmr.msra.gmra.mxu3 %vm95_vm0, %v550_v7 }
  0x4a   :  { %524 = vmatmul.msk.bf16.gmra.mxu1 %vm95_vm0, %v548_v12 }
  0x4b   :  { %540 = vmatmul.msk.bf16.gmra.mxu2 %vm95_vm0, %v548_v12 }
  0x59   :  { %509 = vmatmul.msk.bf16.gmra.mxu0 %vm95_vm0, %v549_v13  ;;  %543 = vmatmul.msk.bf16.gmra.mxu3 %vm95_vm0, %v551_v9 }
  0x5a   :  { %525 = vmatmul.msk.bf16.gmra.mxu1 %vm95_vm0, %v549_v13 }
  0x5b   :  { %541 = vmatmul.msk.bf16.gmra.mxu2 %vm95_vm0, %v549_v13 }
  0x86   :  { %v129_v14 = vpop.f32.mrf.mxu0 }
  0x87   :  { %v194_v15 = vpop.f32.mrf.mxu1  ;;  %v299_v19 = vmul.f32 0.25, %v129_v14 }
  0x8c   :  { %v159_v16 = vpop.f32.mrf.mxu3 }
  0x8d   :  { %v311_v25 = vmul.f32 0.25, %v159_v16 }
  0x8e   :  { %v259_v17 = vpop.f32.mrf.mxu2  ;;  %v131_v18 = vpop.f32.mrf.mxu0 }
  0x8f   :  { %v300_v20 = vmul.f32 0.25, %v131_v18  ;;  %v196_v21 = vpop.f32.mrf.mxu1 }
  0x90   :  { %v601_v22 = vpack.c.bf16 %v196_v21, %v194_v15 }
  0x91   :  { %v561_v23 = vpack.c.bf16 %v300_v20, %v299_v19 }
  0x92   :  { %602 = vst [vmem:[#allocation4] sm:$0xff] %v601_v22  }
  0x93   :  { %562 = vst [vmem:[#allocation2] sm:$0xff] %v561_v23  }
  0x94   :  { %v161_v24 = vpop.f32.mrf.mxu3 }
  0x95   :  { %v312_v26 = vmul.f32 0.25, %v161_v24 }
  0x96   :  { %v261_v27 = vpop.f32.mrf.mxu2  ;;  %v134_v29 = vpop.f32.mrf.mxu0 }
  0x97   :  { %v641_v28 = vpack.c.bf16 %v261_v27, %v259_v17  ;;  %v591_v30 = vpack.c.bf16 %v312_v26, %v311_v25  ;;  %v199_v31 = vpop.f32.mrf.mxu1  ;;  %v301_v35 = vmul.f32 0.25, %v134_v29 }
  0x99   :  { %642 = vst [vmem:[#allocation6] sm:$0xff] %v641_v28  }
  0x9a   :  { %683 = vst [vmem:[#allocation2 + $0x30] sm:$0xff] %v591_v30  }
  0x9c   :  { %v164_v32 = vpop.f32.mrf.mxu3 }
  0x9d   :  { %v313_v41 = vmul.f32 0.25, %v164_v32 }
  0x9e   :  { %v264_v33 = vpop.f32.mrf.mxu2  ;;  %v136_v34 = vpop.f32.mrf.mxu0 }
  0x9f   :  { %v302_v36 = vmul.f32 0.25, %v136_v34  ;;  %v201_v37 = vpop.f32.mrf.mxu1 }
  0xa0   :  { %v606_v38 = vpack.c.bf16 %v201_v37, %v199_v31 }
  0xa1   :  { %v566_v39 = vpack.c.bf16 %v302_v36, %v301_v35 }
  0xa2   :  { %685 = vst [vmem:[#allocation4 + $0x8] sm:$0xff] %v606_v38  }
  0xa3   :  { %678 = vst [vmem:[#allocation2 + $0x8] sm:$0xff] %v566_v39  }
  0xa4   :  { %v166_v40 = vpop.f32.mrf.mxu3 }
  0xa5   :  { %v314_v42 = vmul.f32 0.25, %v166_v40 }
  0xa6   :  { %v266_v43 = vpop.f32.mrf.mxu2  ;;  %v139_v45 = vpop.f32.mrf.mxu0 }
  0xa7   :  { %v646_v44 = vpack.c.bf16 %v266_v43, %v264_v33  ;;  %v596_v46 = vpack.c.bf16 %v314_v42, %v313_v41  ;;  %v204_v47 = vpop.f32.mrf.mxu1  ;;  %v303_v51 = vmul.f32 0.25, %v139_v45 }
  0xa9   :  { %692 = vst [vmem:[#allocation6 + $0x8] sm:$0xff] %v646_v44  }
  0xaa   :  { %684 = vst [vmem:[#allocation2 + $0x38] sm:$0xff] %v596_v46  }
  0xac   :  { %v224_v48 = vpop.f32.mrf.mxu3 }
  0xae   :  { %v269_v49 = vpop.f32.mrf.mxu2  ;;  %v141_v50 = vpop.f32.mrf.mxu0 }
  0xaf   :  { %v304_v52 = vmul.f32 0.25, %v141_v50  ;;  %v206_v53 = vpop.f32.mrf.mxu1 }
  0xb0   :  { %v611_v54 = vpack.c.bf16 %v206_v53, %v204_v47 }
  0xb1   :  { %v571_v55 = vpack.c.bf16 %v304_v52, %v303_v51 }
  0xb2   :  { %686 = vst [vmem:[#allocation4 + $0x10] sm:$0xff] %v611_v54  }
  0xb3   :  { %679 = vst [vmem:[#allocation2 + $0x10] sm:$0xff] %v571_v55  }
  0xb4   :  { %v226_v56 = vpop.f32.mrf.mxu3 }
  0xb5   :  { %v631_v57 = vpack.c.bf16 %v226_v56, %v224_v48 }
  0xb6   :  { %v271_v58 = vpop.f32.mrf.mxu2  ;;  %v144_v60 = vpop.f32.mrf.mxu0 }
  0xb7   :  { %v651_v59 = vpack.c.bf16 %v271_v58, %v269_v49  ;;  %690 = vst [vmem:[#allocation4 + $0x30] sm:$0xff] %v631_v57   ;;  %v209_v61 = vpop.f32.mrf.mxu1  ;;  %v305_v1 = vmul.f32 0.25, %v144_v60 }
  0xb9   :  { %693 = vst [vmem:[#allocation6 + $0x10] sm:$0xff] %v651_v59  }
  0xbc   :  { %v229_v62 = vpop.f32.mrf.mxu3 }
  0xbe   :  { %v274_v63 = vpop.f32.mrf.mxu2  ;;  %v146_v0 = vpop.f32.mrf.mxu0 }
  0xbf   :  { %v306_v2 = vmul.f32 0.25, %v146_v0  ;;  %v211_v3 = vpop.f32.mrf.mxu1 }
  0xc0   :  { %v616_v4 = vpack.c.bf16 %v211_v3, %v209_v61 }
  0xc1   :  { %v576_v5 = vpack.c.bf16 %v306_v2, %v305_v1 }
  0xc2   :  { %687 = vst [vmem:[#allocation4 + $0x18] sm:$0xff] %v616_v4  }
  0xc3   :  { %680 = vst [vmem:[#allocation2 + $0x18] sm:$0xff] %v576_v5  }
  0xc4   :  { %v231_v6 = vpop.f32.mrf.mxu3 }
  0xc5   :  { %v636_v7 = vpack.c.bf16 %v231_v6, %v229_v62 }
  0xc6   :  { %v276_v8 = vpop.f32.mrf.mxu2  ;;  %v149_v10 = vpop.f32.mrf.mxu0 }
  0xc7   :  { %v656_v9 = vpack.c.bf16 %v276_v8, %v274_v63  ;;  %691 = vst [vmem:[#allocation4 + $0x38] sm:$0xff] %v636_v7   ;;  %v214_v11 = vpop.f32.mrf.mxu1  ;;  %v307_v15 = vmul.f32 0.25, %v149_v10 }
  0xc9   :  { %694 = vst [vmem:[#allocation6 + $0x18] sm:$0xff] %v656_v9  }
  0xcc   :  { %v289_v12 = vpop.f32.mrf.mxu3 }
  0xce   :  { %v279_v13 = vpop.f32.mrf.mxu2  ;;  %v151_v14 = vpop.f32.mrf.mxu0 }
  0xcf   :  { %v308_v16 = vmul.f32 0.25, %v151_v14  ;;  %v216_v17 = vpop.f32.mrf.mxu1 }
  0xd0   :  { %v621_v18 = vpack.c.bf16 %v216_v17, %v214_v11 }
  0xd1   :  { %v581_v19 = vpack.c.bf16 %v308_v16, %v307_v15 }
  0xd2   :  { %688 = vst [vmem:[#allocation4 + $0x20] sm:$0xff] %v621_v18  }
  0xd3   :  { %681 = vst [vmem:[#allocation2 + $0x20] sm:$0xff] %v581_v19  }
  0xd4   :  { %v291_v20 = vpop.f32.mrf.mxu3 }
  0xd5   :  { %v671_v22 = vpack.c.bf16 %v291_v20, %v289_v12 }
  0xd6   :  { %v281_v21 = vpop.f32.mrf.mxu2  ;;  %v154_v24 = vpop.f32.mrf.mxu0 }
  0xd7   :  { %v661_v23 = vpack.c.bf16 %v281_v21, %v279_v13  ;;  %697 = vst [vmem:[#allocation6 + $0x30] sm:$0xff] %v671_v22   ;;  %v219_v25 = vpop.f32.mrf.mxu1  ;;  %v309_v29 = vmul.f32 0.25, %v154_v24 }
  0xd9   :  { %695 = vst [vmem:[#allocation6 + $0x20] sm:$0xff] %v661_v23  }
  0xdc   :  { %v294_v26 = vpop.f32.mrf.mxu3 }
  0xde   :  { %v284_v27 = vpop.f32.mrf.mxu2  ;;  %v156_v28 = vpop.f32.mrf.mxu0 }
  0xdf   :  { %v310_v30 = vmul.f32 0.25, %v156_v28  ;;  %v221_v31 = vpop.f32.mrf.mxu1 }
  0xe0   :  { %v626_v32 = vpack.c.bf16 %v221_v31, %v219_v25 }
  0xe1   :  { %v586_v33 = vpack.c.bf16 %v310_v30, %v309_v29 }
  0xe2   :  { %689 = vst [vmem:[#allocation4 + $0x28] sm:$0xff] %v626_v32  }
  0xe3   :  { %682 = vst [vmem:[#allocation2 + $0x28] sm:$0xff] %v586_v33   ;;  %436 = dma.vmem_to_hbm [thread:$0]  %s429_s22, 1024, %s431_s25, [#allocation5], %s789_s11, %s789_s11, %s790_s12  }
  0xe4   :  { %v296_v34 = vpop.f32.mrf.mxu3  ;;  %423 = dma.vmem_to_hbm [thread:$0]  %s416_s27, 1024, %s418_s30, [#allocation3], %s789_s11, %s789_s11, %s790_s12  }
  0xe5   :  { %v676_v36 = vpack.c.bf16 %v296_v34, %v294_v26 }
  0xe6   :  { %v286_v35 = vpop.f32.mrf.mxu2 }
  0xe7   :  { %v666_v37 = vpack.c.bf16 %v286_v35, %v284_v27  ;;  %698 = vst [vmem:[#allocation6 + $0x38] sm:$0xff] %v676_v36  }
  0xe9   :  { %696 = vst [vmem:[#allocation6 + $0x28] sm:$0xff] %v666_v37  }
  0xea   :  { %449 = dma.vmem_to_hbm [thread:$0]  %s442_s8, 1024, %s444_s10, [#allocation5], %s789_s11, %s789_s11, %s790_s12  }
  0xeb   :  { %782 = dma.done.wait [#allocation3], 1024  }
  0xec   :  { %783 = vsyncadd [#allocation3], 4294966272 }
  0xed   :  { %784 = dma.done.wait [#allocation5], 2048  }
  0xee   :  { %785 = vsyncadd [#allocation5], 4294965248 }
  0xef   :  { %462 = vsyncpa [#allocation3], 1 }
  0xf0   :  { %463 = vsyncpa [#allocation5], 1 }

</bundles_post_ra>
